<compile_context>
chip_gen: v7x
topology: tpu7x:2x2x1
jax: 0.10.0
libtpu: 0.0.40
codegen_flags: <defaults>
</compile_context>

<pallas_src>
import jax
import jax.numpy as jnp
from jax.experimental import pallas as pl
from jax.experimental.pallas import tpu as pltpu


def _fused_gemm_kernel(x_ref, w_ref, o_ref):
    """out_tile = x_tile @ W_fused  (single MXU GEMM, f32 accumulation).

    x_ref: (TILE_M, Nx)
    w_ref: (Nx, Ny)     fused softmax(masked_adj) @ out_proj
    o_ref: (TILE_M, Ny)
    """
    # Keep operand dtypes as-is (bf16 stays bf16 on the MXU); accumulate in f32.
    o_ref[...] = jnp.dot(
        x_ref[...], w_ref[...], preferred_element_type=jnp.float32
    ).astype(o_ref.dtype)


def modified_graph_module(x, adj_weight, out_proj, sparse_k=4, tile_m=1024):
    """JAX/Pallas equivalent of ModifiedGraphModule.forward.

    x:          (..., seg_num_x)
    adj_weight: (seg_num_x, seg_num_x)
    out_proj:   (seg_num_x, seg_num_y)
    """
    seg_num_x = adj_weight.shape[0]
    seg_num_y = out_proj.shape[1]

    # --- glue (tiny, constant w.r.t. x): top-k mask -> softmax -> fold proj ---
    _, indices = jax.lax.top_k(adj_weight, sparse_k)          # (Nx, k)
    rows = jnp.arange(seg_num_x)[:, None]
    mask = jnp.zeros_like(adj_weight).at[rows, indices].set(1.0)
    adj_sm = jax.nn.softmax(adj_weight * mask, axis=-1)       # (Nx, Nx)
    w_fused = jnp.dot(
        adj_sm.astype(jnp.float32), out_proj.astype(jnp.float32)
    ).astype(x.dtype)                                         # (Nx, Ny)

    # --- hot path: single tiled GEMM over the flattened leading dims ---
    lead_shape = x.shape[:-1]
    M = 1
    for d in lead_shape:
        M *= d
    x2d = x.reshape(M, seg_num_x)

    # Tile M; keep the tile sublane-aligned (multiple of 8) and no larger than
    # the (rounded-up) problem size.  2 buffers x (tile_m*(Nx+Ny))*4B stays far
    # under the scoped-VMEM limit on all of v5e/v6e/v7x for tile_m <= 2048.
    tile_m = max(8, min(tile_m, pl.cdiv(M, 8) * 8))
    m_pad = pl.cdiv(M, tile_m) * tile_m
    if m_pad != M:
        x2d = jnp.pad(x2d, ((0, m_pad - M), (0, 0)))

    out2d = pl.pallas_call(
        _fused_gemm_kernel,
        out_shape=jax.ShapeDtypeStruct((m_pad, seg_num_y), x.dtype),
        grid=(m_pad // tile_m,),
        in_specs=[
            pl.BlockSpec((tile_m, seg_num_x), lambda i: (i, 0)),
            pl.BlockSpec((seg_num_x, seg_num_y), lambda i: (0, 0)),
        ],
        out_specs=pl.BlockSpec((tile_m, seg_num_y), lambda i: (i, 0)),
        compiler_params=pltpu.CompilerParams(
            dimension_semantics=("parallel",)),
    )(x2d, w_fused)

    if m_pad != M:
        out2d = out2d[:M]
    return out2d.reshape(*lead_shape, seg_num_y)


def reference_forward(x, adj_weight, out_proj, sparse_k=4):
    """Pure-JAX reference matching the PyTorch forward exactly (no fusion)."""
    _, indices = jax.lax.top_k(adj_weight, sparse_k)
    rows = jnp.arange(adj_weight.shape[0])[:, None]
    mask = jnp.zeros_like(adj_weight).at[rows, indices].set(1.0)
    adj = jax.nn.softmax(adj_weight * mask, axis=-1)
    return jnp.matmul(jnp.matmul(x, adj), out_proj)


if __name__ == "__main__":
    seg_num_x = 32
    seg_num_y = 16
    sparse_k = 4
    batch, seq = 2, 8

    key = jax.random.PRNGKey(0)
    k_adj, k_proj, k_x = jax.random.split(key, 3)

    # Deterministic parameter init (matches torch.randn(...) / sqrt(seg_num_x)).
    adj_weight = jax.random.normal(k_adj, (seg_num_x, seg_num_x),
                                   jnp.float32) / (seg_num_x ** 0.5)
    out_proj = jax.random.normal(k_proj, (seg_num_x, seg_num_y),
                                 jnp.float32) / (seg_num_x ** 0.5)
    x = jax.random.normal(k_x, (batch, seq, seg_num_x), jnp.float32)

    out = modified_graph_module(x, adj_weight, out_proj, sparse_k)
    out = jax.block_until_ready(out)

    ref = reference_forward(x, adj_weight, out_proj, sparse_k)
    assert out.shape == (batch, seq, seg_num_y), out.shape
    assert jnp.allclose(out, ref, atol=2e-5, rtol=1e-5), \
        float(jnp.max(jnp.abs(out - ref)))

    print("KERNEL_OK")
</pallas_src>

<mosaic_0001>
module attributes {stable_mosaic.version = 11 : i64} {
  func.func @_fused_gemm_kernel(%arg0: i32, %arg1: memref<16x32xf32, #tpu.memory_space<vmem>>, %arg2: memref<32x16xf32, #tpu.memory_space<vmem>>, %arg3: memref<16x16xf32, #tpu.memory_space<vmem>>) attributes {dimension_semantics = [#tpu.dimension_semantics<parallel>], iteration_bounds = array<i64: 1>, scalar_prefetch = 0 : i64, scratch_operands = 0 : i64, tpu.core_type = #tpu.core_type<tc>, window_params = [{transform_indices = @transform_0, window_bounds = array<i64: 16, 32>}, {pipeline_mode = #tpu.pipeline_mode<synchronous>, transform_indices = @transform_1, window_bounds = array<i64: 32, 16>}, {transform_indices = @transform_2, window_bounds = array<i64: 16, 16>}]} {
    %c0 = arith.constant 0 : index
    %c0_0 = arith.constant 0 : index
    %0 = vector.load %arg1[%c0, %c0_0] : memref<16x32xf32, #tpu.memory_space<vmem>>, vector<16x32xf32>
    %c0_1 = arith.constant 0 : index
    %c0_2 = arith.constant 0 : index
    %1 = vector.load %arg2[%c0_1, %c0_2] : memref<32x16xf32, #tpu.memory_space<vmem>>, vector<32x16xf32>
    %cst = arith.constant dense<0.000000e+00> : vector<16x16xf32>
    %2 = tpu.matmul %0, %1, %cst {dimension_numbers = #tpu.dot_dimension_numbers<[1], [0], [0], [1], [0, 0, 1, 1], [], []>} : vector<16x32xf32>, vector<32x16xf32>, vector<16x16xf32> -> vector<16x16xf32>
    %c0_3 = arith.constant 0 : index
    %c0_4 = arith.constant 0 : index
    %3 = vector.load %arg3[%c0_3, %c0_4] : memref<16x16xf32, #tpu.memory_space<vmem>>, vector<16x16xf32>
    tpu.vector_store %arg3[%c0_3, %c0_4], %2 {strides = array<i32>} : memref<16x16xf32, #tpu.memory_space<vmem>>, vector<16x16xf32>,
    return
  }
  func.func @transform_0(%arg0: i32) -> (i32, i32) {
    %c0_i32 = arith.constant 0 : i32
    %c0_i32_0 = arith.constant 0 : i32
    return %arg0, %c0_i32 : i32, i32
  }
  func.func @transform_1(%arg0: i32) -> (i32, i32) {
    %c0_i32 = arith.constant 0 : i32
    %c0_i32_0 = arith.constant 0 : i32
    %c0_i32_1 = arith.constant 0 : i32
    return %c0_i32, %c0_i32_0 : i32, i32
  }
  func.func @transform_2(%arg0: i32) -> (i32, i32) {
    %c0_i32 = arith.constant 0 : i32
    %c0_i32_0 = arith.constant 0 : i32
    return %arg0, %c0_i32 : i32, i32
  }
}

</mosaic_0001>

<bundles_post_ra>
// kernel: tpu_custom_call.1
= control target key start
LH: loop header
LB: loop body
LE: loop exit
PB: predicated region body
PF: predicated region fallthrough
CT: control target
= control target key end

     0   :  { %vm18_vm0 = vcmask 261120   ;;  %s221_s0 = inlined_call_operand.vmem [shape: f32[16,32], index: 0, kind: input, shape index: {}]   ;;  %s222_s1 = inlined_call_operand.vmem [shape: f32[32,16], index: 1, kind: input, shape index: {}]   ;;  %s223_s2 = inlined_call_operand.hbm [shape: f32[16,16], index: 2, kind: output, shape index: {}]  }
   0x1   :  { %v14_v0 = vld [vmem:[%s222_s1] sm:$0xff]  ;;  %v15_v1 = vld [vmem:[%s222_s1 + $0x8] sm:$0xff]  ;;  %v16_v2 = vld [vmem:[%s222_s1 + $0x10] sm:$0xff] }
   0x2   :  { %v138_v3 = vpack.c.bf16 %v15_v1, %v14_v0  ;;  %v17_v4 = vld [vmem:[%s222_s1 + $0x18] sm:$0xff]  ;;  %v12_v5 = vld [vmem:[%s221_s0] sm:$0xff] }
   0x3   :  { %v142_v6 = vpack.c.bf16 %v17_v4, %v16_v2  ;;  %135 = vmatprep.mubr.msk.f32.mxu0 %vm18_vm0, %v12_v5 }
   0x4   :  { %7 = vsyncpa [#allocation3], 0  ;;  %139 = vmatprep.subr.bf16.mxu0 %v138_v3  ;;  %v13_v7 = vld [vmem:[%s221_s0 + $0x8] sm:$0xff]  ;;  %s173_s21 = smov [#allocation2]   ;;  %vm100_vm1 = vcmask 130048  }
   0x5   :  { %141 = vmatpush3.bf16.msra.mxu0 %v138_v3  ;;  %s108_s22 = sshll.u32 %s173_s21, 4  ;;  %s109_s22 = int_to_ptr.vmem [resolvable:$true] %s108_s22 }
   0x6   :  { %143 = vmatprep.subr.bf16.mxu0 %v142_v6  ;;  %s149_s1 = scalar_lea.vmem %s109_s22, 256  ;;  %p154_p1 = scmp.lt.s32.totalorder %s109_s22, %s109_s22 }
   0x7   :  { %p150_p0 = scmp.ne.s32.totalorder %s109_s22, %s149_s1  ;;  %p155_p2 = scmp.lt.s32.totalorder %s149_s1, %s149_s1 }
   0x9   :  { %145 = vmatpush3.bf16.msra.mxu0 %v142_v6  ;;  %p156_p3 = por %p155_p2, %p154_p1 }
   0xb   :  { %p157_p4 = pnand %p156_p3, %p150_p0 }
   0xc   :  { %136 = vmatmul.mubr.msk.f32.vlgmr.msra.gmra.mrb[0].mxu0 %vm18_vm0, %v13_v7 }
  0xdf   :  { %v137_v8 = vpop.f32.mrb[0].mxu0 }
  0xe0   :  { %102 = vst.msk [vmem:[#allocation2 + $0x8] sm:$0xff] %vm100_vm1, %v137_v8  ;;  %v91_v9 = vpop.f32.mrb[1].mxu0 }
  0xe1   :  { %101 = vst.msk [vmem:[#allocation2] sm:$0xff] %vm100_vm1, %v91_v9 }
  0xe2   :  { %160 = shalt.err (!%p157_p4)
}
  0xe3   :  { %s161_s0 = scalar_lea.hbm %s223_s2, 256 }
  0xe4   :  { %p162_p5 = scmp.ne.s32.totalorder %s223_s2, %s161_s0  ;;  %p165_p6 = scmp.lt.u32.totalorder %s161_s0, %s223_s2 }
  0xe6   :  { %p167_p7 = pnand %p165_p6, %p162_p5 }
  0xe8   :  { %170 = shalt.err (!%p167_p7)
}
  0xe9   :  { %s174_s29 = smov 128   ;;  %s175_s30 = smov 8  }
  0xea   :  { %114 = dma.vmem_to_hbm [thread:$0]  %s109_s22, 256, %s223_s2, [#allocation3], %s174_s29, %s174_s29, %s175_s30  }
  0xeb   :  { %171 = dma.done.wait [#allocation3], 256  }
  0xec   :  { %172 = vsyncadd [#allocation3], 4294967040 }
  0xed   :  { %118 = vsyncpa [#allocation3], 1 }

</bundles_post_ra>
